<compile_context>
chip_gen: v7x
topology: tpu7x:2x2x1
jax: 0.10.0
libtpu: 0.0.40
codegen_flags: <defaults>
</compile_context>

<pallas_src>
import jax
import jax.numpy as jnp
from jax.experimental import pallas as pl
from jax.experimental.pallas import tpu as pltpu


def _conv_embedding_kernel(x_ref, w_ref, o_ref):
    # x_ref: (TM, Kp)   packed tokens (PACK tokens per row, channels last)
    # w_ref: (Kp, Np)   block-diagonal copy of the fused weight W1^T @ W2^T
    # o_ref: (TM, Np)   lane-dense packed output
    o_ref[...] = jnp.dot(
        x_ref[...], w_ref[...], preferred_element_type=jnp.float32
    ).astype(o_ref.dtype)


def _round_up(v, m):
    return ((v + m - 1) // m) * m


def conv_embedding(x, w1, w2, *, tm_max=4096):
    """ConvEmbedding forward.

    x:  (B, L, C) activations
    w1: (E, C, 1) Conv1d(C -> E, k=1, bias=False).weight
    w2: (E, E, 1) Conv1d(E -> E, k=1, bias=False).weight
    returns (B, L, E)
    """
    B, L, C = x.shape
    E = w1.shape[0]
    assert w1.shape == (E, C, 1) and w2.shape == (E, E, 1)

    # Fuse the two 1x1 convs into a single (C, E) weight.
    w_fused = jnp.dot(
        jnp.transpose(w1[:, :, 0]),  # (C, E)
        jnp.transpose(w2[:, :, 0]),  # (E, E)
        preferred_element_type=jnp.float32,
    ).astype(x.dtype)  # (C, E)

    # Lane-density packing factor: make the output last dim a full 128 lanes.
    if E < 128 and 128 % E == 0:
        pack = 128 // E
    else:
        pack = 1
    Kp = pack * C
    Np = pack * E
    # Block-diagonal weight: row r of the packed output is PACK independent
    # token projections laid out side by side.
    w_kernel = jnp.kron(jnp.eye(pack, dtype=x.dtype), w_fused)  # (Kp, Np)

    # Flatten tokens, pad to a multiple of PACK, then pack PACK tokens per row.
    M = B * L
    x2d = x.reshape(M, C)
    m_pad = _round_up(M, pack)
    if m_pad != M:
        x2d = jnp.pad(x2d, ((0, m_pad - M), (0, 0)))
    m_rows = m_pad // pack
    x_packed = x2d.reshape(m_rows, Kp)

    # Tile the packed-row axis; pad so the grid divides evenly and the block
    # sublane dim is a multiple of 8.
    tm = min(tm_max, _round_up(m_rows, 8))
    rows_pad = _round_up(m_rows, tm)
    if rows_pad != m_rows:
        x_packed = jnp.pad(x_packed, ((0, rows_pad - m_rows), (0, 0)))
    grid = (rows_pad // tm,)

    dtype_bytes = jnp.dtype(x.dtype).itemsize
    cost = pl.CostEstimate(
        flops=2 * rows_pad * Kp * Np,
        transcendentals=0,
        bytes_accessed=(rows_pad * (Kp + Np) + Kp * Np) * dtype_bytes,
    )

    out_packed = pl.pallas_call(
        _conv_embedding_kernel,
        out_shape=jax.ShapeDtypeStruct((rows_pad, Np), x.dtype),
        grid_spec=pl.GridSpec(
            grid=grid,
            in_specs=[
                pl.BlockSpec((tm, Kp), lambda i: (i, 0)),
                pl.BlockSpec((Kp, Np), lambda i: (0, 0)),  # VMEM-resident weight
            ],
            out_specs=pl.BlockSpec((tm, Np), lambda i: (i, 0)),
        ),
        compiler_params=pltpu.CompilerParams(
            dimension_semantics=("parallel",),  # shard across TCs on v7x
        ),
        cost_estimate=cost,
    )(x_packed, w_kernel)

    # Un-pack: (rows_pad, PACK*E) row-major -> (rows_pad*PACK, E); drop padding.
    y = out_packed.reshape(rows_pad * pack, E)[:M]
    return y.reshape(B, L, E)


if __name__ == "__main__":
    key = jax.random.PRNGKey(0)
    k_x, k_w1, k_w2 = jax.random.split(key, 3)

    B, L, C, E = 2, 16, 4, 32  # batch, seq len, in_channels, embedding_channels

    x = jax.random.normal(k_x, (B, L, C), dtype=jnp.float32)
    # Deterministic synthetic weights with Conv1d shapes (out, in, kernel=1).
    w1 = jax.random.normal(k_w1, (E, C, 1), dtype=jnp.float32) * 0.1
    w2 = jax.random.normal(k_w2, (E, E, 1), dtype=jnp.float32) * 0.1

    y = conv_embedding(x, w1, w2)
    jax.block_until_ready(y)

    # Reference check in plain JAX (same math as the two 1x1 convs).
    y_ref = (x @ w1[:, :, 0].T) @ w2[:, :, 0].T
    assert y.shape == (B, L, E)
    assert jnp.allclose(y, y_ref, atol=1e-5, rtol=1e-5)

    print("KERNEL_OK")
</pallas_src>

<mosaic_0001>
module attributes {stable_mosaic.version = 11 : i64} {
  func.func @_conv_embedding_kernel(%arg0: i32, %arg1: memref<8x16xf32, #tpu.memory_space<vmem>>, %arg2: memref<16x128xf32, #tpu.memory_space<vmem>>, %arg3: memref<8x128xf32, #tpu.memory_space<vmem>>) attributes {dimension_semantics = [#tpu.dimension_semantics<parallel>], iteration_bounds = array<i64: 1>, scalar_prefetch = 0 : i64, scratch_operands = 0 : i64, tpu.core_type = #tpu.core_type<tc>, window_params = [{transform_indices = @transform_0, window_bounds = array<i64: 8, 16>}, {pipeline_mode = #tpu.pipeline_mode<synchronous>, transform_indices = @transform_1, window_bounds = array<i64: 16, 128>}, {transform_indices = @transform_2, window_bounds = array<i64: 8, 128>}]} {
    %c0 = arith.constant 0 : index
    %c0_0 = arith.constant 0 : index
    %0 = vector.load %arg1[%c0, %c0_0] : memref<8x16xf32, #tpu.memory_space<vmem>>, vector<8x16xf32>
    %c0_1 = arith.constant 0 : index
    %c0_2 = arith.constant 0 : index
    %1 = vector.load %arg2[%c0_1, %c0_2] : memref<16x128xf32, #tpu.memory_space<vmem>>, vector<16x128xf32>
    %cst = arith.constant dense<0.000000e+00> : vector<8x128xf32>
    %2 = tpu.matmul %0, %1, %cst {dimension_numbers = #tpu.dot_dimension_numbers<[1], [0], [0], [1], [0, 0, 1, 1], [], []>} : vector<8x16xf32>, vector<16x128xf32>, vector<8x128xf32> -> vector<8x128xf32>
    %c0_3 = arith.constant 0 : index
    %c0_4 = arith.constant 0 : index
    %3 = vector.load %arg3[%c0_3, %c0_4] : memref<8x128xf32, #tpu.memory_space<vmem>>, vector<8x128xf32>
    tpu.vector_store %arg3[%c0_3, %c0_4], %2 {strides = array<i32>} : memref<8x128xf32, #tpu.memory_space<vmem>>, vector<8x128xf32>,
    return
  }
  func.func @transform_0(%arg0: i32) -> (i32, i32) {
    %c0_i32 = arith.constant 0 : i32
    %c0_i32_0 = arith.constant 0 : i32
    return %arg0, %c0_i32 : i32, i32
  }
  func.func @transform_1(%arg0: i32) -> (i32, i32) {
    %c0_i32 = arith.constant 0 : i32
    %c0_i32_0 = arith.constant 0 : i32
    %c0_i32_1 = arith.constant 0 : i32
    return %c0_i32, %c0_i32_0 : i32, i32
  }
  func.func @transform_2(%arg0: i32) -> (i32, i32) {
    %c0_i32 = arith.constant 0 : i32
    %c0_i32_0 = arith.constant 0 : i32
    return %arg0, %c0_i32 : i32, i32
  }
}

</mosaic_0001>

<bundles_post_ra>
// kernel: tpu_custom_call.1
= control target key start
LH: loop header
LB: loop body
LE: loop exit
PB: predicated region body
PF: predicated region fallthrough
CT: control target
= control target key end

     0   :  { %7 = vsyncpa [#allocation3], 0  ;;  %s292_s0 = inlined_call_operand.hbm [shape: f32[8,16], index: 0, kind: input, shape index: {}]   ;;  %s293_s1 = inlined_call_operand.hbm [shape: f32[16,128], index: 1, kind: input, shape index: {}]   ;;  %s294_s2 = inlined_call_operand.hbm [shape: f32[8,128], index: 2, kind: output, shape index: {}]  }
   0x1   :  { %8 = vsyncpa [#allocation6], 0 }
   0x2   :  { %9 = vsyncpa [#allocation4], 0  ;;  %s226_s9 = smov [#allocation2]   ;;  %s227_s11 = smov [#allocation5]  }
   0x3   :  { %s16_s10 = sshll.u32 %s226_s9, 4  ;;  %s25_s12 = sshll.u32 %s227_s11, 4  ;;  %s17_s10 = int_to_ptr.vmem [resolvable:$true] %s16_s10  ;;  %s249_s12 = int_to_ptr.vmem [resolvable:$true] %s25_s12 }
   0x4   :  { %s154_s15 = scalar_lea.hbm %s292_s0, 128 }
   0x5   :  { %p155_p0 = scmp.ne.s32.totalorder %s292_s0, %s154_s15  ;;  %p158_p1 = scmp.lt.u32.totalorder %s154_s15, %s292_s0 }
   0x7   :  { %p160_p2 = pnand %p158_p1, %p155_p0 }
   0x9   :  { %163 = shalt.err (!%p160_p2)
}
   0xa   :  { %s164_s20 = scalar_lea.vmem %s17_s10, 128  ;;  %p169_p4 = scmp.lt.s32.totalorder %s17_s10, %s17_s10 }
   0xb   :  { %p165_p3 = scmp.ne.s32.totalorder %s17_s10, %s164_s20  ;;  %p170_p5 = scmp.lt.s32.totalorder %s164_s20, %s164_s20 }
   0xd   :  { %p171_p6 = por %p170_p5, %p169_p4 }
   0xf   :  { %p172_p7 = pnand %p171_p6, %p165_p3 }
  0x11   :  { %175 = shalt.err (!%p172_p7)
}
  0x12   :  { %19 = dma.hbm_to_vmem [thread:$0]  %s292_s0, 128, %s17_s10, [#allocation3]  }
  0x13   :  { %s176_s25 = scalar_lea.hbm %s293_s1, 256 }
  0x14   :  { %p177_p8 = scmp.ne.s32.totalorder %s293_s1, %s176_s25  ;;  %p180_p9 = scmp.lt.u32.totalorder %s176_s25, %s293_s1 }
  0x16   :  { %p182_p10 = pnand %p180_p9, %p177_p8 }
  0x18   :  { %185 = shalt.err (!%p182_p10)
}
  0x19   :  { %s186_s30 = scalar_lea.vmem %s249_s12, 256  ;;  %p191_p12 = scmp.lt.s32.totalorder %s249_s12, %s249_s12 }
  0x1a   :  { %p187_p11 = scmp.ne.s32.totalorder %s249_s12, %s186_s30  ;;  %p192_p13 = scmp.lt.s32.totalorder %s186_s30, %s186_s30 }
  0x1c   :  { %p193_p0 = por %p192_p13, %p191_p12 }
  0x1e   :  { %p194_p1 = pnand %p193_p0, %p187_p11 }
  0x20   :  { %197 = shalt.err (!%p194_p1)
}
  0x21   :  { %s228_s0 = smov 128   ;;  %s229_s3 = smov 8  }
  0x22   :  { %31 = dma.hbm_to_vmem [thread:$0]  %s293_s1, 256, %s249_s12, [#allocation6], %s228_s0, %s228_s0, %s229_s3  }
  0x23   :  { %220 = dma.done.wait [#allocation3], 128  }
  0x24   :  { %221 = vsyncadd [#allocation3], 4294967168 }
  0x25   :  { %222 = dma.done.wait [#allocation6], 256  }
  0x26   :  { %223 = vsyncadd [#allocation6], 4294967040  ;;  %v230_v0 = vmov 0.0|0.0   ;;  %vm231_vm0 = vmmov 0   ;;  %v232_v1 = vmov 0.0   ;;  %v39_v2 = vld [vmem:[#allocation5] sm:$0xff] }
  0x27   :  { %143 = vmatprep.subr.bf16.mxu0 %v230_v0  ;;  %140 = vmatprep.mubr.msk.f32.mxu0 %vm231_vm0, %v232_v1  ;;  %v40_v3 = vld [vmem:[#allocation5 + $0x8] sm:$0xff]  ;;  %v38_v5 = vld [vmem:[#allocation2] sm:$0xff]  ;;  %vm41_vm1 = vcmask 130048   ;;  %s233_s6 = smov [#allocation7]  }
  0x28   :  { %v144_v4 = vpack.c.bf16 %v40_v3, %v39_v2  ;;  %s122_s7 = sshll.u32 %s233_s6, 4  ;;  %s123_s7 = int_to_ptr.vmem [resolvable:$true] %s122_s7 }
  0x29   :  { %s198_s1 = scalar_lea.vmem %s123_s7, 128  ;;  %p203_p3 = scmp.lt.s32.totalorder %s123_s7, %s123_s7 }
  0x2a   :  { %145 = vmatpush3.bf16.msra.mxu0 %v144_v4  ;;  %p199_p2 = scmp.ne.s32.totalorder %s123_s7, %s198_s1  ;;  %p204_p4 = scmp.lt.s32.totalorder %s198_s1, %s198_s1 }
  0x2c   :  { %p205_p5 = por %p204_p4, %p203_p3 }
  0x2d   :  { %141 = vmatmul.mubr.msk.f32.vlgmr.msra.gmra.mrb[0].mxu0 %vm41_vm1, %v38_v5 }
  0x2e   :  { %p206_p6 = pnand %p205_p5, %p199_p2 }
 0x100   :  { %v111_v6 = vpop.f32.mrb[0].mxu0 }
 0x101   :  { %115 = vst [vmem:[#allocation7] sm:$0xff] %v111_v6  ;;  %v142_v7 = vpop.f32.mrb[1].mxu0 }
 0x102   :  { %209 = shalt.err (!%p206_p6)
}
 0x103   :  { %s210_s10 = scalar_lea.hbm %s294_s2, 128 }
 0x104   :  { %p211_p7 = scmp.ne.s32.totalorder %s294_s2, %s210_s10  ;;  %p214_p8 = scmp.lt.u32.totalorder %s210_s10, %s294_s2 }
 0x106   :  { %p216_p9 = pnand %p214_p8, %p211_p7 }
 0x108   :  { %219 = shalt.err (!%p216_p9)
}
 0x109   :  { %125 = dma.vmem_to_hbm [thread:$0]  %s123_s7, 128, %s294_s2, [#allocation4]  }
 0x10a   :  { %224 = dma.done.wait [#allocation4], 128  }
 0x10b   :  { %225 = vsyncadd [#allocation4], 4294967168 }
 0x10c   :  { %129 = vsyncpa [#allocation3], 1 }
 0x10d   :  { %130 = vsyncpa [#allocation6], 1 }
 0x10e   :  { %131 = vsyncpa [#allocation4], 1 }

</bundles_post_ra>
